<compile_context>
chip_gen: v7x
topology: tpu7x:2x2x1
jax: 0.10.0
libtpu: 0.0.40
codegen_flags: <defaults>
</compile_context>

<pallas_src>
import jax
import jax.numpy as jnp
from jax.experimental import pallas as pl
from jax.experimental.pallas import tpu as pltpu


def _round_up(v, m):
    return (v + m - 1) // m * m


def _vmem_budgets():
    """(per-input-buffer byte budget, scoped vmem_limit_bytes) per generation."""
    try:
        info = pltpu.get_tpu_info()
        vmem_cap = getattr(info, "vmem_capacity_bytes", 64 * 1024 * 1024)
    except Exception:  # pragma: no cover - be conservative if query fails
        vmem_cap = 64 * 1024 * 1024
    if vmem_cap >= 128 * 1024 * 1024:          # v5e / v6e: 128 MiB VMEM
        return 16 * 1024 * 1024, 64 * 1024 * 1024
    return 8 * 1024 * 1024, 32 * 1024 * 1024   # v7x: 64 MiB VMEM


def _choose_tiles(B, D, itemsize, per_buffer_bytes):
    # Batch tile: multiple of 128.  For B > 128 pick roughly half the batch so
    # the "parallel" batch axis has >= 2 blocks (keeps both v7x TensorCores
    # busy); cap at 1024 so large batches pipeline well.
    if B > 128:
        tb = min(1024, _round_up(pl.cdiv(B, 2), 128))
    else:
        tb = 128
    # Feature tile: a 128-multiple covering all of D if the (tb, td) x tile
    # fits the per-buffer budget (the pipeline double-buffers it); otherwise a
    # bounded 128-multiple slice so VMEM stays safe for any D.
    td_max = max(128, (per_buffer_bytes // (tb * itemsize)) // 128 * 128)
    td = min(_round_up(D, 128), td_max)
    return tb, td


def _make_slp_kernel(tb, td, d_total, needs_mask, resident_w):
    n_chunks = td // 128  # td is always a multiple of 128

    def kernel(x_ref, w_ref, b_ref, o_ref, acc_ref):
        # x_ref: (tb, td) VMEM tile of x
        # w_ref: (1, d_pad) resident weight  OR  (1, td) per-tile weight
        # b_ref: (1, 1) SMEM bias
        # o_ref: (tb, 1) VMEM output tile
        # acc_ref: (tb, 128) f32 persistent VMEM accumulator
        k = pl.program_id(1)

        @pl.when(k == 0)
        def _init():
            acc_ref[...] = jnp.zeros_like(acc_ref)

        x = x_ref[...].astype(jnp.float32)                       # (tb, td)
        if needs_mask:
            # Last feature tile reads past D; zero the garbage tail columns
            # (weight tail is also zero-padded, but NaN * 0 = NaN).
            col = jax.lax.broadcasted_iota(jnp.int32, (tb, td), 1)
            x = jnp.where(col < (d_total - k * td), x, 0.0)

        if resident_w:
            start = pl.multiple_of(k * td, 128)
            w = w_ref[:, pl.ds(start, td)].astype(jnp.float32)   # (1, td)
        else:
            w = w_ref[...].astype(jnp.float32)                   # (1, td)

        # Pure-VPU multiply-accumulate into a lane-folded (tb, 128) accumulator.
        # The cross-lane (XLU) reduction is deferred to the finalize step.
        acc = acc_ref[...]
        for c in range(n_chunks):
            sl = slice(c * 128, (c + 1) * 128)
            acc = acc + x[:, sl] * w[:, sl]
        acc_ref[...] = acc

        @pl.when(k == pl.num_programs(1) - 1)
        def _finalize():
            # Single lane reduction + bias + sigmoid, once per batch tile.
            z = jnp.sum(acc_ref[...], axis=1, keepdims=True) + b_ref[0, 0]
            o_ref[...] = (1.0 / (1.0 + jnp.exp(-z))).astype(o_ref.dtype)

    return kernel


def slp_forward(x, weight, bias, *, block_b=None, block_d=None):
    """x: [B, D], weight: [1, D] (PyTorch nn.Linear layout), bias: [1] or [1, 1].

    Returns sigmoid(x @ weight.T + bias) as [B, 1] float32.
    """
    B, D = x.shape
    assert weight.shape == (1, D), weight.shape
    b_smem = jnp.asarray(bias, jnp.float32).reshape(1, 1)

    per_buffer_bytes, vmem_limit = _vmem_budgets()
    x_itemsize = jnp.dtype(x.dtype).itemsize
    tb, td = _choose_tiles(B, D, x_itemsize, per_buffer_bytes)
    if block_b is not None:
        tb = block_b
    if block_d is not None:
        td = block_d

    nb = pl.cdiv(B, tb)
    nk = pl.cdiv(D, td)
    d_pad = nk * td
    needs_mask = (D % td) != 0

    # Only the tiny weight row is padded; x is left untouched (no extra HBM
    # round-trip of the big activation tensor).
    if d_pad != D:
        weight = jnp.pad(weight, ((0, 0), (0, d_pad - D)))
    w_itemsize = jnp.dtype(weight.dtype).itemsize

    # Keep the whole weight resident in VMEM (fetched once) unless it is huge.
    resident_w = (d_pad * w_itemsize) <= (2 * 1024 * 1024)
    if resident_w:
        w_spec = pl.BlockSpec((1, d_pad), lambda i, k: (0, 0))
    else:
        w_spec = pl.BlockSpec((1, td), lambda i, k: (0, k))

    kernel = _make_slp_kernel(tb, td, D, needs_mask, resident_w)

    cost = pl.CostEstimate(
        flops=2 * B * D,
        transcendentals=B,
        bytes_accessed=B * D * x_itemsize + d_pad * w_itemsize + B * 4,
    )

    out = pl.pallas_call(
        kernel,
        out_shape=jax.ShapeDtypeStruct((B, 1), jnp.float32),
        grid=(nb, nk),
        in_specs=[
            pl.BlockSpec((tb, td), lambda i, k: (i, k)),          # x tile
            w_spec,                                               # weight
            pl.BlockSpec(memory_space=pltpu.MemorySpace.SMEM),    # bias scalar
        ],
        out_specs=pl.BlockSpec((tb, 1), lambda i, k: (i, 0)),
        scratch_shapes=[pltpu.VMEM((tb, 128), jnp.float32)],
        compiler_params=pltpu.CompilerParams(
            dimension_semantics=("parallel", "arbitrary"),
            vmem_limit_bytes=vmem_limit,
        ),
        cost_estimate=cost,
    )(x, weight, b_smem)

    return out


if __name__ == "__main__":
    # Small shapes consistent with the module: batch=8, inputs(features)=32.
    B, D = 8, 32
    key = jax.random.PRNGKey(0)
    kx, kw, kb = jax.random.split(key, 3)

    # Deterministic init mimicking nn.Linear default: U(-1/sqrt(D), 1/sqrt(D)).
    bound = 1.0 / (D ** 0.5)
    x = jax.random.normal(kx, (B, D), dtype=jnp.float32)
    weight = jax.random.uniform(kw, (1, D), minval=-bound, maxval=bound,
                                dtype=jnp.float32)      # PyTorch [out=1, in=D]
    bias = jax.random.uniform(kb, (1,), minval=-bound, maxval=bound,
                              dtype=jnp.float32)

    out = jax.block_until_ready(slp_forward(x, weight, bias))

    # Sanity check against plain-JAX reference.
    ref = jax.nn.sigmoid(x @ weight.T + bias)
    assert out.shape == (B, 1), out.shape
    assert jnp.allclose(out, ref, atol=1e-5, rtol=1e-5)

    print("KERNEL_OK")
</pallas_src>

<mosaic_0001>
module attributes {stable_mosaic.version = 11 : i64} {
  func.func @kernel(%arg0: i32, %arg1: i32, %arg2: memref<128x128xf32, #tpu.memory_space<vmem>>, %arg3: memref<1x128xf32, #tpu.memory_space<vmem>>, %arg4: memref<1x1xf32, #tpu.memory_space<smem>>, %arg5: memref<128x1xf32, #tpu.memory_space<vmem>>, %arg6: memref<128x128xf32, #tpu.memory_space<vmem>>) attributes {dimension_semantics = [#tpu.dimension_semantics<parallel>, #tpu.dimension_semantics<arbitrary>], iteration_bounds = array<i64: 1, 1>, scalar_prefetch = 0 : i64, scratch_operands = 1 : i64, tpu.core_type = #tpu.core_type<tc>, window_params = [{transform_indices = @transform_0, window_bounds = array<i64: 128, 128>}, {pipeline_mode = #tpu.pipeline_mode<synchronous>, transform_indices = @transform_1, window_bounds = array<i64: 1, 128>}, {transform_indices = @transform_2, window_bounds = array<i64: 1, 1>}, {transform_indices = @transform_3, window_bounds = array<i64: 128, 1>}]} {
    %c0_i32 = arith.constant 0 : i32
    %0 = arith.cmpi eq, %arg1, %c0_i32 : i32
    %1 = arith.extui %0 : i1 to i32
    %c0_i32_0 = arith.constant 0 : i32
    %2 = arith.cmpi ne, %1, %c0_i32_0 : i32
    scf.if %2 {
      %cst_10 = arith.constant 0.000000e+00 : f32
      %23 = vector.broadcast %cst_10 : f32 to vector<128x128xf32>
      %c0_11 = arith.constant 0 : index
      %c0_12 = arith.constant 0 : index
      %24 = vector.load %arg6[%c0_11, %c0_12] : memref<128x128xf32, #tpu.memory_space<vmem>>, vector<128x128xf32>
      tpu.vector_store %arg6[%c0_11, %c0_12], %23 {strides = array<i32>} : memref<128x128xf32, #tpu.memory_space<vmem>>, vector<128x128xf32>,
    } else {
    }
    %c0 = arith.constant 0 : index
    %c0_1 = arith.constant 0 : index
    %3 = vector.load %arg2[%c0, %c0_1] : memref<128x128xf32, #tpu.memory_space<vmem>>, vector<128x128xf32>
    %4 = tpu.iota {dimensions = array<i32: 1>} : vector<128x128xi32>
    %c128_i32 = arith.constant 128 : i32
    %5 = arith.muli %arg1, %c128_i32 : i32
    %c32_i32 = arith.constant 32 : i32
    %6 = arith.subi %c32_i32, %5 : i32
    %7 = vector.broadcast %6 : i32 to vector<128x128xi32>
    %8 = arith.cmpi slt, %4, %7 : vector<128x128xi32>
    %cst = arith.constant 0.000000e+00 : f32
    %9 = vector.broadcast %cst : f32 to vector<128x128xf32>
    %10 = arith.select %8, %3, %9 : vector<128x128xi1>, vector<128x128xf32>
    %c128_i32_2 = arith.constant 128 : i32
    %11 = arith.muli %arg1, %c128_i32_2 : i32
    %12 = tpu.assume_multiple %11, 128 : i32
    %c0_3 = arith.constant 0 : index
    %13 = arith.index_cast %12 : i32 to index
    %14 = vector.load %arg3[%c0_3, %13] : memref<1x128xf32, #tpu.memory_space<vmem>>, vector<1x128xf32>
    %c0_4 = arith.constant 0 : index
    %c0_5 = arith.constant 0 : index
    %15 = vector.load %arg6[%c0_4, %c0_5] : memref<128x128xf32, #tpu.memory_space<vmem>>, vector<128x128xf32>
    %16 = vector.broadcast %14 : vector<1x128xf32> to vector<128x128xf32>
    %17 = arith.mulf %10, %16 : vector<128x128xf32>
    %18 = arith.addf %15, %17 : vector<128x128xf32>
    %c0_6 = arith.constant 0 : index
    %c0_7 = arith.constant 0 : index
    %19 = vector.load %arg6[%c0_6, %c0_7] : memref<128x128xf32, #tpu.memory_space<vmem>>, vector<128x128xf32>
    tpu.vector_store %arg6[%c0_6, %c0_7], %18 {strides = array<i32>} : memref<128x128xf32, #tpu.memory_space<vmem>>, vector<128x128xf32>,
    %c0_i32_8 = arith.constant 0 : i32
    %20 = arith.cmpi eq, %arg1, %c0_i32_8 : i32
    %21 = arith.extui %20 : i1 to i32
    %c0_i32_9 = arith.constant 0 : i32
    %22 = arith.cmpi ne, %21, %c0_i32_9 : i32
    scf.if %22 {
      %c0_10 = arith.constant 0 : index
      %c0_11 = arith.constant 0 : index
      %23 = vector.load %arg6[%c0_10, %c0_11] : memref<128x128xf32, #tpu.memory_space<vmem>>, vector<128x128xf32>
      %cst_12 = arith.constant dense<0.000000e+00> : vector<128xf32>
      %24 = vector.multi_reduction <add>, %23, %cst_12 [1] : vector<128x128xf32> to vector<128xf32>
      %25 = vector.shape_cast %24 : vector<128xf32> to vector<128x1xf32>
      %c0_13 = arith.constant 0 : index
      %c0_14 = arith.constant 0 : index
      %26 = memref.load %arg4[%c0_13, %c0_14] : memref<1x1xf32, #tpu.memory_space<smem>>
      %27 = vector.broadcast %26 : f32 to vector<128x1xf32>
      %28 = arith.addf %25, %27 : vector<128x1xf32>
      %cst_15 = arith.constant 0.000000e+00 : f32
      %29 = vector.broadcast %cst_15 : f32 to vector<128x1xf32>
      %30 = arith.subf %29, %28 : vector<128x1xf32>
      %31 = math.exp %30 : vector<128x1xf32>
      %cst_16 = arith.constant 1.000000e+00 : f32
      %32 = vector.broadcast %cst_16 : f32 to vector<128x1xf32>
      %33 = arith.addf %32, %31 : vector<128x1xf32>
      %cst_17 = arith.constant 1.000000e+00 : f32
      %34 = vector.broadcast %cst_17 : f32 to vector<128x1xf32>
      %35 = arith.divf %34, %33 : vector<128x1xf32>
      %c0_18 = arith.constant 0 : index
      %c0_19 = arith.constant 0 : index
      %36 = vector.load %arg5[%c0_18, %c0_19] : memref<128x1xf32, #tpu.memory_space<vmem>>, vector<128x1xf32>
      tpu.vector_store %arg5[%c0_18, %c0_19], %35 {strides = array<i32>} : memref<128x1xf32, #tpu.memory_space<vmem>>, vector<128x1xf32>,
    } else {
    }
    return
  }
  func.func @transform_0(%arg0: i32, %arg1: i32) -> (i32, i32) {
    %c0_i32 = arith.constant 0 : i32
    return %arg0, %arg1 : i32, i32
  }
  func.func @transform_1(%arg0: i32, %arg1: i32) -> (i32, i32) {
    %c0_i32 = arith.constant 0 : i32
    %c0_i32_0 = arith.constant 0 : i32
    %c0_i32_1 = arith.constant 0 : i32
    return %c0_i32, %c0_i32_0 : i32, i32
  }
  func.func @transform_2(%arg0: i32, %arg1: i32) -> (i32, i32) {
    %c0_i32 = arith.constant 0 : i32
    %c0_i32_0 = arith.constant 0 : i32
    %c0_i32_1 = arith.constant 0 : i32
    return %c0_i32, %c0_i32_0 : i32, i32
  }
  func.func @transform_3(%arg0: i32, %arg1: i32) -> (i32, i32) {
    %c0_i32 = arith.constant 0 : i32
    %c0_i32_0 = arith.constant 0 : i32
    return %arg0, %c0_i32 : i32, i32
  }
}

</mosaic_0001>

<bundles_post_ra>
// kernel: tpu_custom_call.1
= control target key start
LH: loop header
LB: loop body
LE: loop exit
PB: predicated region body
PF: predicated region fallthrough
CT: control target
= control target key end

     0   :  { %9 = vsyncpa [#allocation5], 0  ;;  %s556_s0 = inlined_call_operand.hbm [shape: f32[8,32], index: 0, kind: input, shape index: {}]   ;;  %s557_s1 = inlined_call_operand.vmem [shape: f32[1,128], index: 1, kind: input, shape index: {}]   ;;  %s558_s2 = inlined_call_operand.<no memory space> [shape: f32[1,1], index: 2, kind: input, shape index: {}]   ;;  %s559_s3 = inlined_call_operand.vmem [shape: f32[8,1], index: 3, kind: output, shape index: {}]  }
   0x1   :  { %14 = vsyncadd [#allocation5], 1920  ;;  %s477_s12 = smov [#allocation4]   ;;  %s453_s16 = scalar_lea.hbm %s556_s0, 128 }
   0x2   :  { %s15_s13 = sshll.u32 %s477_s12, 4  ;;  %p454_p0 = scmp.ne.s32.totalorder %s556_s0, %s453_s16  ;;  %s16_s13 = int_to_ptr.vmem [resolvable:$true] %s15_s13 }
   0x3   :  { %p457_p1 = scmp.lt.u32.totalorder %s453_s16, %s556_s0 }
   0x5   :  { %p459_p2 = pnand %p457_p1, %p454_p0 }
   0x7   :  { %462 = shalt.err (!%p459_p2)
}
   0x8   :  { %s463_s21 = scalar_lea.vmem %s16_s13, 128  ;;  %s467_s22 = scalar_lea.vmem %s16_s13, 2048 }
   0x9   :  { %p464_p3 = scmp.ne.s32.totalorder %s16_s13, %s463_s21  ;;  %p468_p4 = scmp.lt.s32.totalorder %s16_s13, %s16_s13 }
   0xa   :  { %p469_p5 = scmp.lt.s32.totalorder %s467_s22, %s463_s21 }
   0xc   :  { %p470_p6 = por %p469_p5, %p468_p4 }
   0xe   :  { %p471_p7 = pnand %p470_p6, %p464_p3 }
  0x10   :  { %474 = shalt.err (!%p471_p7)
}
  0x11   :  { %s478_s23 = smov 128   ;;  %s479_s24 = smov 8  }
  0x12   :  { %21 = dma.hbm_to_vmem [thread:$0]  %s556_s0, 128, %s16_s13, [#allocation5], %s478_s23, %s478_s23, %s479_s24  }
  0x13   :  { %475 = dma.done.wait [#allocation5], 2048  }
  0x14   :  { %476 = vsyncadd [#allocation5], 4294965248  ;;  %v65_v0 = vlaneseq  ;;  %v51_v2 = vld [vmem:[#allocation4 + $0x10] sm:$0xff]  ;;  %v385_v3 = vld [vmem:[%s557_s1] ss:$0 sm:$0xff]  ;;  %v534_v51 = vstv %s558_s2  ;;  %vm326_vm1 = vcmask 7168  }
  0x15   :  { %v49_v4 = vld [vmem:[#allocation4] sm:$0xff]  ;;  %v52_v7 = vld [vmem:[#allocation4 + $0x18] sm:$0xff]  ;;  %v50_v8 = vld [vmem:[#allocation4 + $0x8] sm:$0xff] }
  0x16   :  { %v66_v1 = vand.u32 127, %v65_v0  ;;  %v54_v13 = vld [vmem:[#allocation4 + $0x28] sm:$0xff]  ;;  %v53_v14 = vld [vmem:[#allocation4 + $0x20] sm:$0xff]  ;;  %v56_v19 = vld [vmem:[#allocation4 + $0x38] sm:$0xff] }
  0x17   :  { %v55_v20 = vld [vmem:[#allocation4 + $0x30] sm:$0xff]  ;;  %v58_v25 = vld [vmem:[#allocation4 + $0x48] sm:$0xff]  ;;  %v57_v26 = vld [vmem:[#allocation4 + $0x40] sm:$0xff] }
  0x18   :  { %vm70_vm0 = vcmp.lt.s32.totalorder %v66_v1, 32  ;;  %v60_v31 = vld [vmem:[#allocation4 + $0x58] sm:$0xff]  ;;  %v59_v32 = vld [vmem:[#allocation4 + $0x50] sm:$0xff]  ;;  %v62_v37 = vld [vmem:[#allocation4 + $0x68] sm:$0xff] }
  0x19   :  { %v73_v5 = vsel %vm70_vm0, %v51_v2, 0.0  ;;  %v71_v6 = vsel %vm70_vm0, %v49_v4, 0.0  ;;  %v74_v11 = vsel %vm70_vm0, %v52_v7, 0.0  ;;  %v72_v12 = vsel %vm70_vm0, %v50_v8, 0.0  ;;  %v61_v38 = vld [vmem:[#allocation4 + $0x60] sm:$0xff]  ;;  %v64_v43 = vld [vmem:[#allocation4 + $0x78] sm:$0xff] }
  0x1a   :  { %v115_v9 = vmul.f32 %v385_v3, %v73_v5  ;;  %v113_v10 = vmul.f32 %v385_v3, %v71_v6  ;;  %v116_v15 = vmul.f32 %v385_v3, %v74_v11  ;;  %v114_v16 = vmul.f32 %v385_v3, %v72_v12  ;;  %v63_v44 = vld [vmem:[#allocation4 + $0x70] sm:$0xff] }
  0x1b   :  { %v76_v17 = vsel %vm70_vm0, %v54_v13, 0.0  ;;  %v75_v18 = vsel %vm70_vm0, %v53_v14, 0.0  ;;  %v78_v23 = vsel %vm70_vm0, %v56_v19, 0.0  ;;  %v77_v24 = vsel %vm70_vm0, %v55_v20, 0.0 }
  0x1c   :  { %184 = vadd.xlane.f32.xlu1 %v115_v9  ;;  %180 = vadd.xlane.f32.xlu0 %v113_v10  ;;  %v118_v21 = vmul.f32 %v385_v3, %v76_v17  ;;  %v117_v22 = vmul.f32 %v385_v3, %v75_v18  ;;  %v120_v27 = vmul.f32 %v385_v3, %v78_v23  ;;  %v80_v29 = vsel %vm70_vm0, %v58_v25, 0.0 }
  0x1d   :  { %v119_v28 = vmul.f32 %v385_v3, %v77_v24  ;;  %v79_v30 = vsel %vm70_vm0, %v57_v26, 0.0  ;;  %v122_v33 = vmul.f32 %v385_v3, %v80_v29  ;;  %v82_v35 = vsel %vm70_vm0, %v60_v31, 0.0 }
  0x1e   :  { %v121_v34 = vmul.f32 %v385_v3, %v79_v30  ;;  %v81_v36 = vsel %vm70_vm0, %v59_v32, 0.0  ;;  %v124_v39 = vmul.f32 %v385_v3, %v82_v35  ;;  %v84_v41 = vsel %vm70_vm0, %v62_v37, 0.0 }
  0x1f   :  { %v123_v40 = vmul.f32 %v385_v3, %v81_v36  ;;  %v83_v42 = vsel %vm70_vm0, %v61_v38, 0.0  ;;  %v126_v45 = vmul.f32 %v385_v3, %v84_v41  ;;  %v86_v47 = vsel %vm70_vm0, %v64_v43, 0.0 }
  0x20   :  { %186 = vadd.xlane.f32.xlu1 %v116_v15  ;;  %182 = vadd.xlane.f32.xlu0 %v114_v16  ;;  %v125_v46 = vmul.f32 %v385_v3, %v83_v42  ;;  %v85_v48 = vsel %vm70_vm0, %v63_v44, 0.0  ;;  %v128_v49 = vmul.f32 %v385_v3, %v86_v47 }
  0x21   :  { %v127_v50 = vmul.f32 %v385_v3, %v85_v48 }
  0x24   :  { %190 = vadd.xlane.f32.xlu1 %v118_v21  ;;  %188 = vadd.xlane.f32.xlu0 %v117_v22 }
  0x28   :  { %194 = vadd.xlane.f32.xlu1 %v120_v27  ;;  %192 = vadd.xlane.f32.xlu0 %v119_v28 }
  0x2c   :  { %198 = vadd.xlane.f32.xlu1 %v122_v33  ;;  %196 = vadd.xlane.f32.xlu0 %v121_v34 }
  0x30   :  { %202 = vadd.xlane.f32.xlu1 %v124_v39  ;;  %200 = vadd.xlane.f32.xlu0 %v123_v40 }
  0x34   :  { %206 = vadd.xlane.f32.xlu1 %v126_v45  ;;  %204 = vadd.xlane.f32.xlu0 %v125_v46 }
  0x38   :  { %210 = vadd.xlane.f32.xlu1 %v128_v49  ;;  %208 = vadd.xlane.f32.xlu0 %v127_v50 }
  0xa9   :  { %v185_v52 = vpop.xlane.xlu1 %184  ;;  %v181_v53 = vpop.xlane.xlu0 %180 }
  0xaa   :  { %v216_v54 = vadd.f32 %v534_v51, %v185_v52  ;;  %v214_v55 = vadd.f32 %v534_v51, %v181_v53 }
  0xac   :  { %v232_v56 = vsub.f32 0.0, %v216_v54  ;;  %v230_v57 = vsub.f32 0.0, %v214_v55 }
  0xad   :  { %v187_v58 = vpop.xlane.xlu1 %186  ;;  %v183_v59 = vpop.xlane.xlu0 %182 }
  0xae   :  { %v250_v60 = vmul.f32 1.442695, %v232_v56  ;;  %v246_v61 = vmul.f32 1.442695, %v230_v57  ;;  %v217_v62 = vadd.f32 %v534_v51, %v187_v58  ;;  %v215_v63 = vadd.f32 %v534_v51, %v183_v59 }
  0xb0   :  { %389 = vpow2.f32 %v250_v60  ;;  %v233_v0 = vsub.f32 0.0, %v217_v62  ;;  %v231_v1 = vsub.f32 0.0, %v215_v63 }
  0xb1   :  { %391 = vpow2.f32 %v246_v61  ;;  %v191_v2 = vpop.xlane.xlu1 %190  ;;  %v189_v3 = vpop.xlane.xlu0 %188 }
  0xb2   :  { %v252_v4 = vmul.f32 1.442695, %v233_v0  ;;  %v248_v5 = vmul.f32 1.442695, %v231_v1  ;;  %v219_v6 = vadd.f32 %v534_v51, %v191_v2  ;;  %v218_v7 = vadd.f32 %v534_v51, %v189_v3 }
  0xb4   :  { %393 = vpow2.f32 %v252_v4  ;;  %v235_v8 = vsub.f32 0.0, %v219_v6  ;;  %v234_v9 = vsub.f32 0.0, %v218_v7 }
  0xb5   :  { %395 = vpow2.f32 %v248_v5  ;;  %v195_v10 = vpop.xlane.xlu1 %194  ;;  %v193_v11 = vpop.xlane.xlu0 %192 }
  0xb6   :  { %v256_v12 = vmul.f32 1.442695, %v235_v8  ;;  %v254_v13 = vmul.f32 1.442695, %v234_v9  ;;  %v221_v14 = vadd.f32 %v534_v51, %v195_v10  ;;  %v220_v15 = vadd.f32 %v534_v51, %v193_v11 }
  0xb8   :  { %397 = vpow2.f32 %v256_v12  ;;  %v237_v16 = vsub.f32 0.0, %v221_v14  ;;  %v236_v17 = vsub.f32 0.0, %v220_v15 }
  0xb9   :  { %399 = vpow2.f32 %v254_v13  ;;  %v199_v18 = vpop.xlane.xlu1 %198  ;;  %v197_v19 = vpop.xlane.xlu0 %196 }
  0xba   :  { %v390_v20 = vpop.eup %389  ;;  %v260_v21 = vmul.f32 1.442695, %v237_v16  ;;  %v223_v22 = vadd.f32 %v534_v51, %v199_v18  ;;  %v222_v23 = vadd.f32 %v534_v51, %v197_v19  ;;  %v258_v26 = vmul.f32 1.442695, %v236_v17 }
  0xbb   :  { %v392_v24 = vpop.eup %391  ;;  %v280_v25 = vadd.f32 1.0, %v390_v20 }
  0xbc   :  { %v278_v27 = vadd.f32 1.0, %v392_v24  ;;  %401 = vpow2.f32 %v260_v21  ;;  %v239_v28 = vsub.f32 0.0, %v223_v22  ;;  %v238_v29 = vsub.f32 0.0, %v222_v23 }
  0xbd   :  { %403 = vrcp.f32 %v280_v25  ;;  %v203_v30 = vpop.xlane.xlu1 %202  ;;  %v201_v31 = vpop.xlane.xlu0 %200 }
  0xbe   :  { %v394_v32 = vpop.eup %393  ;;  %405 = vrcp.f32 %v278_v27  ;;  %v264_v33 = vmul.f32 1.442695, %v239_v28  ;;  %v225_v34 = vadd.f32 %v534_v51, %v203_v30  ;;  %v262_v37 = vmul.f32 1.442695, %v238_v29 }
  0xbf   :  { %v396_v35 = vpop.eup %395  ;;  %v281_v36 = vadd.f32 1.0, %v394_v32  ;;  %407 = vpow2.f32 %v258_v26  ;;  %v224_v38 = vadd.f32 %v534_v51, %v201_v31 }
  0xc0   :  { %v279_v39 = vadd.f32 1.0, %v396_v35  ;;  %409 = vpow2.f32 %v264_v33  ;;  %v241_v40 = vsub.f32 0.0, %v225_v34 }
  0xc1   :  { %411 = vrcp.f32 %v281_v36  ;;  %v240_v41 = vsub.f32 0.0, %v224_v38  ;;  %v207_v42 = vpop.xlane.xlu1 %206  ;;  %v205_v43 = vpop.xlane.xlu0 %204 }
  0xc2   :  { %v398_v44 = vpop.eup %397  ;;  %413 = vrcp.f32 %v279_v39  ;;  %v268_v45 = vmul.f32 1.442695, %v241_v40  ;;  %v227_v46 = vadd.f32 %v534_v51, %v207_v42  ;;  %v226_v47 = vadd.f32 %v534_v51, %v205_v43 }
  0xc3   :  { %v400_v48 = vpop.eup %399  ;;  %v283_v49 = vadd.f32 1.0, %v398_v44  ;;  %415 = vpow2.f32 %v262_v37  ;;  %v266_v50 = vmul.f32 1.442695, %v240_v41 }
  0xc4   :  { %v282_v52 = vadd.f32 1.0, %v400_v48  ;;  %417 = vpow2.f32 %v268_v45  ;;  %v243_v53 = vsub.f32 0.0, %v227_v46  ;;  %v242_v54 = vsub.f32 0.0, %v226_v47 }
  0xc5   :  { %419 = vrcp.f32 %v283_v49  ;;  %v211_v55 = vpop.xlane.xlu1 %210  ;;  %v209_v56 = vpop.xlane.xlu0 %208 }
  0xc6   :  { %v402_v57 = vpop.eup %401  ;;  %421 = vrcp.f32 %v282_v52  ;;  %v272_v58 = vmul.f32 1.442695, %v243_v53  ;;  %v270_v59 = vmul.f32 1.442695, %v242_v54  ;;  %v229_v60 = vadd.f32 %v534_v51, %v211_v55 }
  0xc7   :  { %v404_v61 = vpop.eup %403  ;;  %v285_v62 = vadd.f32 1.0, %v402_v57  ;;  %423 = vpow2.f32 %v266_v50  ;;  %v228_v63 = vadd.f32 %v534_v51, %v209_v56 }
  0xc8   :  { %v406_v0 = vpop.eup %405  ;;  %425 = vpow2.f32 %v272_v58  ;;  %v245_v1 = vsub.f32 0.0, %v229_v60 }
  0xc9   :  { %v408_v2 = vpop.eup %407  ;;  %327 = vst.msk [vmem:[#allocation6] sm:$0xff] %vm326_vm1, %v406_v0  ;;  %427 = vrcp.f32 %v285_v62  ;;  %v244_v3 = vsub.f32 0.0, %v228_v63 }
  0xca   :  { %v410_v4 = vpop.eup %409  ;;  %v284_v5 = vadd.f32 1.0, %v408_v2  ;;  %429 = vpow2.f32 %v270_v59  ;;  %v276_v6 = vmul.f32 1.442695, %v245_v1 }
  0xcb   :  { %v412_v7 = vpop.eup %411  ;;  %v287_v8 = vadd.f32 1.0, %v410_v4  ;;  %v274_v9 = vmul.f32 1.442695, %v244_v3 }
  0xcc   :  { %v414_v10 = vpop.eup %413  ;;  %431 = vrcp.f32 %v284_v5 }
  0xcd   :  { %v416_v11 = vpop.eup %415  ;;  %433 = vrcp.f32 %v287_v8 }
  0xce   :  { %v418_v51 = vpop.eup %417  ;;  %v286_v12 = vadd.f32 1.0, %v416_v11  ;;  %435 = vpow2.f32 %v276_v6 }
  0xcf   :  { %v420_v13 = vpop.eup %419  ;;  %v289_v14 = vadd.f32 1.0, %v418_v51  ;;  %437 = vpow2.f32 %v274_v9 }
  0xd0   :  { %v422_v15 = vpop.eup %421  ;;  %v372_v16 = vld [vmem:[#allocation6] sm:$0xff]  ;;  %439 = vrcp.f32 %v286_v12 }
  0xd1   :  { %v424_v17 = vpop.eup %423  ;;  %373 = vst [vmem:[%s559_s3] sm:$0xff] %v372_v16  ;;  %441 = vrcp.f32 %v289_v14 }
  0xd2   :  { %v426_v18 = vpop.eup %425  ;;  %v288_v19 = vadd.f32 1.0, %v424_v17 }
  0xd3   :  { %v428_v20 = vpop.eup %427  ;;  %v291_v21 = vadd.f32 1.0, %v426_v18 }
  0xd4   :  { %v430_v22 = vpop.eup %429  ;;  %443 = vrcp.f32 %v288_v19 }
  0xd5   :  { %445 = vrcp.f32 %v291_v21  ;;  %v290_v23 = vadd.f32 1.0, %v430_v22 }
  0xd6   :  { %v432_v24 = vpop.eup %431 }
  0xd7   :  { %v434_v25 = vpop.eup %433  ;;  %447 = vrcp.f32 %v290_v23 }
  0xd8   :  { %v436_v26 = vpop.eup %435 }
  0xd9   :  { %v438_v27 = vpop.eup %437  ;;  %v293_v28 = vadd.f32 1.0, %v436_v26 }
  0xda   :  { %v440_v29 = vpop.eup %439  ;;  %v292_v30 = vadd.f32 1.0, %v438_v27 }
  0xdb   :  { %v442_v31 = vpop.eup %441  ;;  %449 = vrcp.f32 %v293_v28 }
  0xdc   :  { %451 = vrcp.f32 %v292_v30 }
  0xde   :  { %v444_v32 = vpop.eup %443 }
  0xdf   :  { %v446_v33 = vpop.eup %445 }
  0xe1   :  { %v448_v34 = vpop.eup %447 }
  0xe5   :  { %v450_v35 = vpop.eup %449 }
  0xe6   :  { %v452_v36 = vpop.eup %451 }
  0xe7   :  { %379 = vsyncpa [#allocation5], 1 }

</bundles_post_ra>
